<compile_context>
chip_gen: v5e
topology: v5e:2x2
jax: 0.10.0
libtpu: 0.0.40
codegen_flags: <defaults>
</compile_context>

<pallas_src>
import functools

import numpy as np

import jax
import jax.numpy as jnp
from jax.experimental import pallas as pl
from jax.experimental.pallas import tpu as pltpu


def _mean_sub_kernel(x_ref, o_ref):
    """General path: reduce over the lane (last) axis.  Block = (tile_rows, H)."""
    xf = x_ref[...].astype(jnp.float32)
    inv_h = jnp.float32(1.0 / xf.shape[-1])
    mean = jnp.sum(xf, axis=-1, keepdims=True) * inv_h        # XLU lane reduce
    # TODO(synk): if a bundle dump ever shows the XLU as the binding slot for
    # bf16 inputs on v6e/v7x, offload this reduce to the (idle) MXU by dotting
    # against a ones(H, 128) / H matrix instead.
    o_ref[...] = (xf - mean).astype(o_ref.dtype)


def _mean_sub_packed_kernel(x_ref, avg_ref, o_ref):
    """Lane-packed path for small H.

    Block = (tile_rows, 128); each 128-wide row holds 128 // H independent
    length-H segments.  `avg_ref` is a resident (128, 128) block-diagonal
    averaging matrix (constant index_map, DMA'd once), so the per-step body is
    a single MXU matmul plus one subtract -- no per-step matrix construction
    and no manual hi/lo precision splitting on the VPU.
    """
    xf = x_ref[...].astype(jnp.float32)
    mean = jnp.dot(xf, avg_ref[...],
                   precision=jax.lax.Precision.HIGHEST,
                   preferred_element_type=jnp.float32)
    o_ref[...] = (xf - mean).astype(o_ref.dtype)


def _round_up(a: int, b: int) -> int:
    return ((a + b - 1) // b) * b


@functools.lru_cache(maxsize=None)
def _avg_matrix(h: int, g: int):
    """(g*h, g*h) block-diagonal matrix with 1/h inside each h x h block."""
    m = np.kron(np.eye(g, dtype=np.float32),
                np.full((h, h), 1.0 / h, dtype=np.float32))
    return jnp.asarray(m)


def _chip_budget():
    """(target_block_bytes_f32_equiv, vmem_ceiling_bytes) for this chip."""
    try:
        vmem_cap = int(pltpu.get_tpu_info().vmem_capacity_bytes)
    except Exception:
        vmem_cap = 64 * 1024 * 1024            # unknown: assume smallest (v7x)
    if vmem_cap >= 96 * 1024 * 1024:           # v5e / v6e: 128 MiB VMEM
        return 8 * 1024 * 1024, 96 * 1024 * 1024
    return 4 * 1024 * 1024, 48 * 1024 * 1024   # v7x: 64 MiB per-TC VMEM


def custom_layer_norm(x):
    """x - x.mean(-1, keepdims=True), computed in a Pallas TPU kernel."""
    orig_shape = x.shape
    H = int(orig_shape[-1])
    rows = 1
    for d in orig_shape[:-1]:
        rows *= int(d)
    if rows == 0 or H == 0:
        return x

    itemsize = jnp.dtype(x.dtype).itemsize
    row_align = max(8, 32 // itemsize)     # sublane packing for the dtype

    # Lane-packed layout when H is lane-sparse and packs evenly into 128 lanes.
    g = 128 // H if (H < 128 and 128 % H == 0) else 1
    use_packed = g > 1

    rows_pad = rows
    if use_packed:
        rem = rows % g
        if rem:
            # Pad the flat view up to a whole 128-wide packed row: one extra
            # (still lane-dense) pass over the data, instead of reverting the
            # entire tensor to 16/128-lane masked loads/stores.
            rows_pad = rows + (g - rem)
            flat = jnp.pad(x.reshape(rows * H), (0, (g - rem) * H))
        else:
            flat = x.reshape(rows * H)
        rows_eff, width = rows_pad // g, g * H             # width == 128
        x2d = flat.reshape(rows_eff, width)
        kernel = _mean_sub_packed_kernel
    else:
        rows_eff, width = rows, H
        x2d = x.reshape(rows_eff, width)
        kernel = _mean_sub_kernel
        # NOTE: H < 128 with 128 % H != 0 is correct but lane-sparse here.
        # TODO(synk): very large H (>~0.5M f32) would need a lane-tiled
        # two-pass reduction to keep the (rows, H) block inside VMEM.

    # --- Tile selection: largest aligned row tile within the block budget. ---
    target_block_bytes, vmem_ceiling = _chip_budget()
    tr = (target_block_bytes // (width * 4)) // row_align * row_align
    tr = max(row_align, tr)
    tr = min(tr, _round_up(rows_eff, row_align))
    # Aim for >= 4 grid steps (>= 2 per TensorCore on v7x megacore) so both
    # cores get pipelined work whenever the row count allows it.
    min_steps = 4
    if pl.cdiv(rows_eff, tr) < min_steps and rows_eff >= min_steps * row_align:
        tr = max(row_align, _round_up(pl.cdiv(rows_eff, min_steps), row_align))
    grid = (pl.cdiv(rows_eff, tr),)

    # --- Explicit VMEM budget: double-buffered in/out blocks + f32 temps. ---
    block_elems = tr * width
    needed = (2 * 2 * block_elems * itemsize          # 2x-buffered input + output
              + 3 * block_elems * 4                   # f32 compute temporaries
              + (2 * width * width * 4 if use_packed else 0)   # resident avg
              + (2 << 20))                            # compiler scratch headroom
    vmem_limit_bytes = int(min(max(needed, 32 * 1024 * 1024), vmem_ceiling))

    if use_packed:
        inputs = (x2d, _avg_matrix(H, g))
        in_specs = [pl.BlockSpec((tr, width), lambda i: (i, 0)),
                    pl.BlockSpec((width, width), lambda i: (0, 0))]
    else:
        inputs = (x2d,)
        in_specs = [pl.BlockSpec((tr, width), lambda i: (i, 0))]

    out2d = pl.pallas_call(
        kernel,
        out_shape=jax.ShapeDtypeStruct((rows_eff, width), x.dtype),
        grid_spec=pltpu.PrefetchScalarGridSpec(
            num_scalar_prefetch=0,
            grid=grid,
            in_specs=in_specs,
            out_specs=pl.BlockSpec((tr, width), lambda i: (i, 0)),
        ),
        compiler_params=pltpu.CompilerParams(
            dimension_semantics=("parallel",),
            vmem_limit_bytes=vmem_limit_bytes,
        ),
    )(*inputs)

    if rows_pad != rows:
        return out2d.reshape(rows_pad * H)[: rows * H].reshape(orig_shape)
    return out2d.reshape(orig_shape)


if __name__ == "__main__":
    key = jax.random.PRNGKey(0)

    def _ref(v):
        vf = v.astype(jnp.float32)
        return (vf - jnp.mean(vf, axis=-1, keepdims=True)).astype(v.dtype)

    # 1) Small NCHW-like input (module is shape-agnostic; the last dim is the
    #    reduced one).  H=16 exercises the lane-packed MXU path.
    x = jax.random.normal(key, (2, 4, 16, 16), dtype=jnp.float32)
    out = jax.block_until_ready(custom_layer_norm(x))
    assert out.shape == x.shape
    assert jnp.allclose(out, _ref(x), atol=2e-5, rtol=1e-5)

    # 2) General path (H multiple of 128) with non-tile-divisible row count.
    x2 = jax.random.normal(jax.random.PRNGKey(1), (3, 5, 7, 256), dtype=jnp.float32)
    out2 = jax.block_until_ready(custom_layer_norm(x2))
    assert out2.shape == x2.shape
    assert jnp.allclose(out2, _ref(x2), atol=1e-5, rtol=1e-5)

    # 3) General path with H not a multiple of 128 (lane padding must be masked
    #    out of the reduction).
    x3 = jax.random.normal(jax.random.PRNGKey(2), (2, 3, 7, 192), dtype=jnp.float32)
    out3 = jax.block_until_ready(custom_layer_norm(x3))
    assert out3.shape == x3.shape
    assert jnp.allclose(out3, _ref(x3), atol=1e-5, rtol=1e-5)

    # 4) Packed path with rows % g != 0 (tail handled by lane-dense padding,
    #    not by falling back to lane-sparse traffic).
    x4 = jax.random.normal(jax.random.PRNGKey(3), (3, 5, 16), dtype=jnp.float32)
    out4 = jax.block_until_ready(custom_layer_norm(x4))
    assert out4.shape == x4.shape
    assert jnp.allclose(out4, _ref(x4), atol=2e-5, rtol=1e-5)

    # 5) bf16 input through the packed path (dtype round-trip).
    x5 = jax.random.normal(jax.random.PRNGKey(4), (4, 64, 16), dtype=jnp.bfloat16)
    out5 = jax.block_until_ready(custom_layer_norm(x5))
    assert out5.shape == x5.shape and out5.dtype == x5.dtype
    assert jnp.allclose(out5.astype(jnp.float32), _ref(x5).astype(jnp.float32),
                        atol=3e-2, rtol=3e-2)

    print("KERNEL_OK")
</pallas_src>

<mosaic_0001>
module attributes {stable_mosaic.version = 11 : i64} {
  func.func @_mean_sub_packed_kernel(%arg0: i32, %arg1: memref<16x128xf32, #tpu.memory_space<vmem>>, %arg2: memref<128x128xf32, #tpu.memory_space<vmem>>, %arg3: memref<16x128xf32, #tpu.memory_space<vmem>>) attributes {dimension_semantics = [#tpu.dimension_semantics<parallel>], iteration_bounds = array<i64: 1>, scalar_prefetch = 0 : i64, scratch_operands = 0 : i64, tpu.core_type = #tpu.core_type<tc>, window_params = [{transform_indices = @transform_0, window_bounds = array<i64: 16, 128>}, {pipeline_mode = #tpu.pipeline_mode<synchronous>, transform_indices = @transform_1, window_bounds = array<i64: 128, 128>}, {transform_indices = @transform_2, window_bounds = array<i64: 16, 128>}]} {
    %c0 = arith.constant 0 : index
    %c0_0 = arith.constant 0 : index
    %0 = vector.load %arg1[%c0, %c0_0] : memref<16x128xf32, #tpu.memory_space<vmem>>, vector<16x128xf32>
    %c0_1 = arith.constant 0 : index
    %c0_2 = arith.constant 0 : index
    %1 = vector.load %arg2[%c0_1, %c0_2] : memref<128x128xf32, #tpu.memory_space<vmem>>, vector<128x128xf32>
    %cst = arith.constant dense<0.000000e+00> : vector<16x128xf32>
    %2 = tpu.matmul %0, %1, %cst {dimension_numbers = #tpu.dot_dimension_numbers<[1], [0], [0], [1], [0, 0, 1, 1], [], []>, precision = #tpu.contract_precision<fp32>} : vector<16x128xf32>, vector<128x128xf32>, vector<16x128xf32> -> vector<16x128xf32>
    %3 = arith.subf %0, %2 : vector<16x128xf32>
    %c0_3 = arith.constant 0 : index
    %c0_4 = arith.constant 0 : index
    %4 = vector.load %arg3[%c0_3, %c0_4] : memref<16x128xf32, #tpu.memory_space<vmem>>, vector<16x128xf32>
    tpu.vector_store %arg3[%c0_3, %c0_4], %3 {strides = array<i32>} : memref<16x128xf32, #tpu.memory_space<vmem>>, vector<16x128xf32>,
    return
  }
  func.func @transform_0(%arg0: i32) -> (i32, i32) {
    %c0_i32 = arith.constant 0 : i32
    %c0_i32_0 = arith.constant 0 : i32
    return %arg0, %c0_i32 : i32, i32
  }
  func.func @transform_1(%arg0: i32) -> (i32, i32) {
    %c0_i32 = arith.constant 0 : i32
    %c0_i32_0 = arith.constant 0 : i32
    %c0_i32_1 = arith.constant 0 : i32
    return %c0_i32, %c0_i32_0 : i32, i32
  }
  func.func @transform_2(%arg0: i32) -> (i32, i32) {
    %c0_i32 = arith.constant 0 : i32
    %c0_i32_0 = arith.constant 0 : i32
    return %arg0, %c0_i32 : i32, i32
  }
}

</mosaic_0001>

<bundles_post_ra>
// kernel: tpu_custom_call.1
= control target key start
LH: loop header
LB: loop body
LE: loop exit
PB: predicated region body
PF: predicated region fallthrough
CT: control target
= control target key end

     0   :  { %7 = vsyncpa [#allocation3], 0  ;;  %s825_s0 = inlined_call_operand.hbm [shape: f32[16,128], index: 0, kind: input, shape index: {}]   ;;  %s826_s1 = inlined_call_operand.hbm [shape: f32[128,128], index: 1, kind: input, shape index: {}]   ;;  %s827_s2 = inlined_call_operand.hbm [shape: f32[16,128], index: 2, kind: output, shape index: {}]  }
   0x1   :  { %8 = vsyncpa [#allocation6], 0 }
   0x2   :  { %9 = vsyncpa [#allocation4], 0  ;;  %s14_s11 = sshll.u32 %s825_s0, 4  ;;  %s573_s12 = smov [#allocation2]   ;;  %s15_s11 = int_to_ptr.hbm [resolvable:$true] %s14_s11 }
   0x3   :  { %s16_s13 = sshll.u32 %s573_s12, 4  ;;  %s27_s16 = sshll.u32 %s826_s1, 4  ;;  %s17_s13 = int_to_ptr.vmem [resolvable:$true] %s16_s13  ;;  %s28_s16 = int_to_ptr.hbm [resolvable:$true] %s27_s16 }
   0x4   :  { %s574_s17 = smov 128   ;;  %s575_s18 = smov 8  }
   0x5   :  { %22 = dma.hbm_to_vmem [thread:$0]  %s15_s11, 256, %s17_s13, [#allocation3], %s574_s17, %s574_s17, %s575_s18  }
   0x6   :  { %s576_s19 = smov [#allocation5]  }
   0x7   :  { %s29_s20 = sshll.u32 %s576_s19, 4  ;;  %s30_s20 = int_to_ptr.vmem [resolvable:$true] %s29_s20 }
   0x8   :  { %35 = dma.hbm_to_vmem [thread:$0]  %s28_s16, 2048, %s30_s20, [#allocation6], %s574_s17, %s574_s17, %s575_s18  }
   0x9   :  { %567 = dma.done.wait [#allocation3], 256  }
   0xa   :  { %568 = vsyncadd [#allocation3], 4294967040 }
   0xb   :  { %569 = dma.done.wait [#allocation6], 2048  }
   0xc   :  { %570 = vsyncadd [#allocation6], 4294965248  ;;  %v61_v0 = vld [vmem:[#allocation5 + $0x78] sm:$0xff]  ;;  %v60_v1 = vld [vmem:[#allocation5 + $0x70] sm:$0xff]  ;;  %s577_s0 = smov [#allocation7]   ;;  %s444_s23 = sshll.u32 %s827_s2, 4  ;;  %s445_s23 = int_to_ptr.hbm [resolvable:$true] %s444_s23 }
   0xd   :  { %v59_v2 = vld [vmem:[#allocation5 + $0x68] sm:$0xff]  ;;  %v605_v3 = vand.u32 4294901760, %v61_v0  ;;  %v607_v4 = vand.u32 4294901760, %v60_v1  ;;  %v58_v6 = vld [vmem:[#allocation5 + $0x60] sm:$0xff]  ;;  %v57_v7 = vld [vmem:[#allocation5 + $0x58] sm:$0xff]  ;;  %s442_s1 = sshll.u32 %s577_s0, 4  ;;  %s443_s1 = int_to_ptr.vmem [resolvable:$true] %s442_s1 }
   0xe   :  { %v609_v5 = vand.u32 4294901760, %v59_v2  ;;  %v56_v8 = vld [vmem:[#allocation5 + $0x50] sm:$0xff]  ;;  %v611_v9 = vand.u32 4294901760, %v58_v6  ;;  %v613_v10 = vand.u32 4294901760, %v57_v7  ;;  %v55_v12 = vld [vmem:[#allocation5 + $0x48] sm:$0xff]  ;;  %v54_v13 = vld [vmem:[#allocation5 + $0x40] sm:$0xff] }
   0xf   :  { %v615_v11 = vand.u32 4294901760, %v56_v8  ;;  %63 = vmatpush.msra.mxu0 %v605_v3  ;;  %v112_v14 = vsub.f32 %v61_v0, %v605_v3  ;;  %v118_v15 = vsub.f32 %v60_v1, %v607_v4  ;;  %276 = vmatpush.msra.mxu3 %v605_v3  ;;  %v622_v17 = vand.u32 4294901760, %v55_v12  ;;  %v53_v18 = vld [vmem:[#allocation5 + $0x38] sm:$0xff]  ;;  %v52_v26 = vld [vmem:[#allocation5 + $0x30] sm:$0xff]  ;;  %v51_v36 = vld [vmem:[#allocation5 + $0x28] sm:$0xff] }
  0x10   :  { %v124_v16 = vsub.f32 %v59_v2, %v609_v5  ;;  %v130_v19 = vsub.f32 %v58_v6, %v611_v9  ;;  %v136_v20 = vsub.f32 %v57_v7, %v613_v10  ;;  %v626_v21 = vand.u32 4294901760, %v54_v13  ;;  %v50_v42 = vld [vmem:[#allocation5 + $0x20] sm:$0xff]  ;;  %v49_v48 = vld [vmem:[#allocation5 + $0x18] sm:$0xff]  ;;  %v48_v54 = vld [vmem:[#allocation5 + $0x10] sm:$0xff] }
  0x11   :  { %65 = vmatpush.msra.mxu0 %v607_v4  ;;  %218 = vmatpush.msra.mxu2 %v112_v14  ;;  %v629_v22 = vand.u32 4294901760, %v112_v14  ;;  %v631_v23 = vand.u32 4294901760, %v118_v15  ;;  %v142_v25 = vsub.f32 %v56_v8, %v615_v11  ;;  %v148_v28 = vsub.f32 %v55_v12, %v622_v17  ;;  %v47_v60 = vld [vmem:[#allocation5 + $0x8] sm:$0xff]  ;;  %v46_v2 = vld [vmem:[#allocation5] sm:$0xff] }
  0x12   :  { %v633_v24 = vand.u32 4294901760, %v124_v16  ;;  %278 = vmatpush.msra.mxu3 %v607_v4  ;;  %v637_v27 = vand.u32 4294901760, %v130_v19  ;;  %v640_v29 = vand.u32 4294901760, %v53_v18  ;;  %v646_v33 = vand.u32 4294901760, %v136_v20 }
  0x13   :  { %67 = vmatpush.msra.mxu0 %v609_v5  ;;  %221 = vmatpush.msra.mxu2 %v118_v15  ;;  %v114_v30 = vsub.f32 %v112_v14, %v629_v22  ;;  %v120_v31 = vsub.f32 %v118_v15, %v631_v23  ;;  %v154_v34 = vsub.f32 %v54_v13, %v626_v21  ;;  %v650_v35 = vand.u32 4294901760, %v52_v26 }
  0x14   :  { %v126_v32 = vsub.f32 %v124_v16, %v633_v24  ;;  %280 = vmatpush.msra.mxu3 %v609_v5  ;;  %v132_v39 = vsub.f32 %v130_v19, %v637_v27  ;;  %v654_v40 = vand.u32 4294901760, %v142_v25  ;;  %v657_v41 = vand.u32 4294901760, %v148_v28 }
  0x15   :  { %69 = vmatpush.msra.mxu0 %v611_v9  ;;  %224 = vmatpush.msra.mxu2 %v124_v16  ;;  %v115_v37 = vand.u32 4294901760, %v114_v30  ;;  %v121_v38 = vand.u32 4294901760, %v120_v31  ;;  %v138_v44 = vsub.f32 %v136_v20, %v646_v33  ;;  %v160_v45 = vsub.f32 %v53_v18, %v640_v29 }
  0x16   :  { %282 = vmatpush.msra.mxu3 %v611_v9  ;;  %v127_v43 = vand.u32 4294901760, %v126_v32  ;;  %v662_v46 = vand.u32 4294901760, %v51_v36  ;;  %v665_v47 = vand.u32 4294901760, %v154_v34  ;;  %v133_v49 = vand.u32 4294901760, %v132_v39 }
  0x17   :  { %71 = vmatpush.msra.mxu0 %v613_v10  ;;  %116 = vmatpush.msra.mxu1 %v115_v37  ;;  %v144_v50 = vsub.f32 %v142_v25, %v654_v40  ;;  %v166_v51 = vsub.f32 %v52_v26, %v650_v35  ;;  %v670_v52 = vand.u32 4294901760, %v50_v42  ;;  %v150_v53 = vsub.f32 %v148_v28, %v657_v41 }
  0x18   :  { %227 = vmatpush.msra.mxu2 %v130_v19  ;;  %284 = vmatpush.msra.mxu3 %v613_v10  ;;  %v139_v55 = vand.u32 4294901760, %v138_v44  ;;  %v172_v56 = vsub.f32 %v51_v36, %v662_v46  ;;  %v676_v57 = vand.u32 4294901760, %v49_v48  ;;  %v678_v58 = vand.u32 4294901760, %v160_v45 }
  0x19   :  { %73 = vmatpush.msra.mxu0 %v615_v11  ;;  %122 = vmatpush.msra.mxu1 %v121_v38  ;;  %v156_v59 = vsub.f32 %v154_v34, %v665_v47  ;;  %v145_v61 = vand.u32 4294901760, %v144_v50  ;;  %v178_v62 = vsub.f32 %v50_v42, %v670_v52  ;;  %v684_v63 = vand.u32 4294901760, %v48_v54  ;;  %v721_v38 = vld [vmem:[#allocation2] sm:$0xff] }
  0x1a   :  { %230 = vmatpush.msra.mxu2 %v136_v20  ;;  %286 = vmatpush.msra.mxu3 %v615_v11  ;;  %v686_v0 = vand.u32 4294901760, %v166_v51  ;;  %v151_v1 = vand.u32 4294901760, %v150_v53  ;;  %v162_v6 = vsub.f32 %v160_v45, %v678_v58  ;;  %v184_v7 = vsub.f32 %v49_v48, %v676_v57 }
  0x1b   :  { %75 = vmatpush.msra.mxu0 %v622_v17  ;;  %128 = vmatpush.msra.mxu1 %v127_v43  ;;  %v692_v8 = vand.u32 4294901760, %v47_v60  ;;  %v694_v12 = vand.u32 4294901760, %v172_v56  ;;  %v157_v13 = vand.u32 4294901760, %v156_v59  ;;  %v190_v15 = vsub.f32 %v48_v54, %v684_v63 }
  0x1c   :  { %233 = vmatpush.msra.mxu2 %v142_v25  ;;  %288 = vmatpush.msra.mxu3 %v622_v17  ;;  %v168_v14 = vsub.f32 %v166_v51, %v686_v0  ;;  %v700_v16 = vand.u32 4294901760, %v46_v2  ;;  %v702_v18 = vand.u32 4294901760, %v178_v62  ;;  %v163_v19 = vand.u32 4294901760, %v162_v6 }
  0x1d   :  { %77 = vmatpush.msra.mxu0 %v626_v21  ;;  %134 = vmatpush.msra.mxu1 %v133_v49  ;;  %v174_v20 = vsub.f32 %v172_v56, %v694_v12  ;;  %v196_v25 = vsub.f32 %v47_v60, %v692_v8  ;;  %v708_v26 = vand.u32 4294901760, %v184_v7  ;;  %v714_v32 = vand.u32 4294901760, %v190_v15 }
  0x1e   :  { %236 = vmatpush.msra.mxu2 %v148_v28  ;;  %290 = vmatpush.msra.mxu3 %v626_v21  ;;  %v169_v28 = vand.u32 4294901760, %v168_v14  ;;  %v180_v30 = vsub.f32 %v178_v62, %v702_v18  ;;  %v202_v31 = vsub.f32 %v46_v2, %v700_v16  ;;  %v730_v44 = vand.u32 4294901760, %v721_v38 }
  0x1f   :  { %79 = vmatpush.msra.mxu0 %v640_v29  ;;  %140 = vmatpush.msra.mxu1 %v139_v55  ;;  %v186_v36 = vsub.f32 %v184_v7, %v708_v26  ;;  %v719_v37 = vand.u32 4294901760, %v196_v25  ;;  %v192_v42 = vsub.f32 %v190_v15, %v714_v32  ;;  %v743_v55 = vld [vmem:[#allocation2 + $0x8] sm:$0xff] }
  0x20   :  { %239 = vmatpush.msra.mxu2 %v154_v34  ;;  %292 = vmatpush.msra.mxu3 %v640_v29  ;;  %v175_v34 = vand.u32 4294901760, %v174_v20  ;;  %v181_v39 = vand.u32 4294901760, %v180_v30  ;;  %v726_v43 = vand.u32 4294901760, %v202_v31  ;;  %v751_v59 = vand.u32 4294901760, %v743_v55 }
  0x21   :  { %81 = vmatpush.msra.mxu0 %v650_v35  ;;  %146 = vmatpush.msra.mxu1 %v145_v61  ;;  %v198_v48 = vsub.f32 %v196_v25, %v719_v37  ;;  %v193_v49 = vand.u32 4294901760, %v192_v42 }
  0x22   :  { %242 = vmatpush.msra.mxu2 %v160_v45  ;;  %294 = vmatpush.msra.mxu3 %v650_v35  ;;  %v187_v45 = vand.u32 4294901760, %v186_v36  ;;  %v204_v50 = vsub.f32 %v202_v31, %v726_v43 }
  0x23   :  { %83 = vmatpush.msra.mxu0 %v662_v46  ;;  %152 = vmatpush.msra.mxu1 %v151_v1  ;;  %v199_v53 = vand.u32 4294901760, %v198_v48 }
  0x24   :  { %245 = vmatpush.msra.mxu2 %v166_v51  ;;  %296 = vmatpush.msra.mxu3 %v662_v46  ;;  %v95_v51 = vsub.f32 %v721_v38, %v730_v44  ;;  %v205_v54 = vand.u32 4294901760, %v204_v50 }
  0x25   :  { %85 = vmatpush.msra.mxu0 %v670_v52  ;;  %158 = vmatpush.msra.mxu1 %v157_v13 }
  0x26   :  { %248 = vmatpush.msra.mxu2 %v172_v56  ;;  %298 = vmatpush.msra.mxu3 %v670_v52  ;;  %v96_v56 = vand.u32 4294901760, %v95_v51 }
  0x27   :  { %87 = vmatpush.msra.mxu0 %v676_v57  ;;  %164 = vmatpush.msra.mxu1 %v163_v19 }
  0x28   :  { %251 = vmatpush.msra.mxu2 %v178_v62  ;;  %300 = vmatpush.msra.mxu3 %v676_v57 }
  0x29   :  { %89 = vmatpush.msra.mxu0 %v684_v63  ;;  %170 = vmatpush.msra.mxu1 %v169_v28 }
  0x2a   :  { %254 = vmatpush.msra.mxu2 %v184_v7  ;;  %302 = vmatpush.msra.mxu3 %v684_v63 }
  0x2b   :  { %91 = vmatpush.msra.mxu0 %v692_v8  ;;  %176 = vmatpush.msra.mxu1 %v175_v34 }
  0x2c   :  { %257 = vmatpush.msra.mxu2 %v190_v15  ;;  %304 = vmatpush.msra.mxu3 %v692_v8 }
  0x2d   :  { %93 = vmatpush.msra.mxu0 %v700_v16  ;;  %182 = vmatpush.msra.mxu1 %v181_v39 }
  0x2e   :  { %260 = vmatpush.msra.mxu2 %v196_v25  ;;  %306 = vmatpush.msra.mxu3 %v700_v16 }
  0x2f   :  { %323 = vmatpush.msrb.mxu0 %v629_v22  ;;  %188 = vmatpush.msra.mxu1 %v187_v45 }
  0x30   :  { %263 = vmatpush.msra.mxu2 %v202_v31  ;;  %474 = vmatpush.msrb.mxu3 %v605_v3 }
  0x31   :  { %327 = vmatpush.msrb.mxu0 %v631_v23  ;;  %194 = vmatpush.msra.mxu1 %v193_v49 }
  0x32   :  { %458 = vmatpush.msrb.mxu2 %v629_v22  ;;  %475 = vmatpush.msrb.mxu3 %v607_v4  ;;  %v97_v22 = vsub.f32 %v95_v51, %v96_v56 }
  0x33   :  { %331 = vmatpush.msrb.mxu0 %v633_v24  ;;  %200 = vmatpush.msra.mxu1 %v199_v53 }
  0x34   :  { %459 = vmatpush.msrb.mxu2 %v631_v23  ;;  %476 = vmatpush.msrb.mxu3 %v609_v5  ;;  %v103_v23 = vsub.f32 %v743_v55, %v751_v59 }
  0x35   :  { %335 = vmatpush.msrb.mxu0 %v637_v27  ;;  %206 = vmatpush.msra.mxu1 %v205_v54 }
  0x36   :  { %460 = vmatpush.msrb.mxu2 %v633_v24  ;;  %477 = vmatpush.msrb.mxu3 %v611_v9 }
  0x37   :  { %339 = vmatpush.msrb.mxu0 %v646_v33  ;;  %394 = vmatpush.msrb.mxu1 %v605_v3  ;;  %v98_v3 = vand.u32 4294901760, %v97_v22 }
  0x38   :  { %461 = vmatpush.msrb.mxu2 %v637_v27  ;;  %478 = vmatpush.msrb.mxu3 %v613_v10 }
  0x39   :  { %343 = vmatpush.msrb.mxu0 %v654_v40  ;;  %396 = vmatpush.msrb.mxu1 %v607_v4  ;;  %v104_v4 = vand.u32 4294901760, %v103_v23 }
  0x3a   :  { %462 = vmatpush.msrb.mxu2 %v646_v33  ;;  %479 = vmatpush.msrb.mxu3 %v615_v11 }
  0x3b   :  { %347 = vmatpush.msrb.mxu0 %v657_v41  ;;  %398 = vmatpush.msrb.mxu1 %v609_v5  ;;  %v105_v5 = vsub.f32 %v103_v23, %v104_v4 }
  0x3c   :  { %463 = vmatpush.msrb.mxu2 %v654_v40  ;;  %99 = vmatmul.f32.vlgmr.msra.gmra.mxu0 %v98_v3 }
  0x3d   :  { %351 = vmatpush.msrb.mxu0 %v665_v47  ;;  %400 = vmatpush.msrb.mxu1 %v611_v9  ;;  %v106_v9 = vand.u32 4294901760, %v105_v5 }
  0x3e   :  { %464 = vmatpush.msrb.mxu2 %v657_v41  ;;  %480 = vmatpush.msrb.mxu3 %v622_v17 }
  0x3f   :  { %402 = vmatpush.msrb.mxu1 %v613_v10  ;;  %355 = vmatpush.msrb.mxu0 %v678_v58 }
  0x40   :  { %465 = vmatpush.msrb.mxu2 %v665_v47  ;;  %481 = vmatpush.msrb.mxu3 %v626_v21 }
  0x41   :  { %266 = vmatmul.f32.vlgmr.msra.gmra.mxu2 %v95_v51  ;;  %359 = vmatpush.msrb.mxu0 %v686_v0 }
  0x42   :  { %466 = vmatpush.msrb.mxu2 %v678_v58  ;;  %404 = vmatpush.msrb.mxu1 %v615_v11 }
  0x43   :  { %310 = vmatmul.f32.vlgmr.msra.gmra.mxu3 %v96_v56  ;;  %363 = vmatpush.msrb.mxu0 %v694_v12 }
  0x44   :  { %467 = vmatpush.msrb.mxu2 %v686_v0  ;;  %406 = vmatpush.msrb.mxu1 %v622_v17 }
  0x45   :  { %482 = vmatpush.msrb.mxu3 %v640_v29  ;;  %208 = vmatmul.f32.vlgmr.msra.gmra.mxu1 %v730_v44 }
  0x46   :  { %468 = vmatpush.msrb.mxu2 %v694_v12  ;;  %367 = vmatpush.msrb.mxu0 %v702_v18 }
  0x47   :  { %408 = vmatpush.msrb.mxu1 %v626_v21  ;;  %483 = vmatpush.msrb.mxu3 %v650_v35 }
  0x48   :  { %107 = vmatmul.f32.gmra.mxu0 %v106_v9  ;;  %469 = vmatpush.msrb.mxu2 %v702_v18 }
  0x49   :  { %371 = vmatpush.msrb.mxu0 %v708_v26  ;;  %410 = vmatpush.msrb.mxu1 %v640_v29 }
  0x4a   :  { %484 = vmatpush.msrb.mxu3 %v662_v46  ;;  %271 = vmatmul.f32.gmra.mxu2 %v103_v23 }
  0x4b   :  { %470 = vmatpush.msrb.mxu2 %v708_v26  ;;  %375 = vmatpush.msrb.mxu0 %v714_v32 }
  0x4c   :  { %412 = vmatpush.msrb.mxu1 %v650_v35  ;;  %485 = vmatpush.msrb.mxu3 %v670_v52 }
  0x4d   :  { %316 = vmatmul.f32.gmra.mxu3 %v104_v4  ;;  %471 = vmatpush.msrb.mxu2 %v714_v32 }
  0x4e   :  { %379 = vmatpush.msrb.mxu0 %v719_v37  ;;  %414 = vmatpush.msrb.mxu1 %v662_v46 }
  0x4f   :  { %486 = vmatpush.msrb.mxu3 %v676_v57  ;;  %212 = vmatmul.f32.gmra.mxu1 %v751_v59 }
  0x50   :  { %472 = vmatpush.msrb.mxu2 %v719_v37  ;;  %383 = vmatpush.msrb.mxu0 %v726_v43 }
  0x51   :  { %416 = vmatpush.msrb.mxu1 %v670_v52  ;;  %487 = vmatpush.msrb.mxu3 %v684_v63 }
  0x52   :  { %385 = vmatmul.f32.vlgmr.msrb.gmra.mxu0 %v730_v44  ;;  %473 = vmatpush.msrb.mxu2 %v726_v43 }
  0x53   :  { %418 = vmatpush.msrb.mxu1 %v676_v57  ;;  %488 = vmatpush.msrb.mxu3 %v692_v8 }
  0x54   :  { %389 = vmatmul.f32.vlgmr.msrb.gmra.mxu2 %v751_v59 }
  0x55   :  { %420 = vmatpush.msrb.mxu1 %v684_v63  ;;  %489 = vmatpush.msrb.mxu3 %v700_v16 }
  0x56   :  { %430 = vmatmul.f32.vlgmr.msrb.gmra.mxu3 %v751_v59 }
  0x57   :  { %422 = vmatpush.msrb.mxu1 %v692_v8 }
  0x59   :  { %424 = vmatpush.msrb.mxu1 %v700_v16 }
  0x5a   :  { %426 = vmatmul.f32.vlgmr.msrb.gmra.mxu1 %v730_v44 }
  0xb9   :  { %v100_v10 = vpop.f32.mrf.mxu0 }
  0xc2   :  { %v209_v11 = vpop.f32.mrf.mxu1 }
  0xc3   :  { %v210_v27 = vadd.f32 %v209_v11, %v100_v10 }
  0xc4   :  { %v267_v17 = vpop.f32.mrf.mxu2 }
  0xc5   :  { %v108_v24 = vpop.f32.mrf.mxu0  ;;  %v268_v40 = vadd.f32 %v267_v17, %v210_v27 }
  0xc6   :  { %v311_v21 = vpop.f32.mrf.mxu3 }
  0xc7   :  { %v312_v52 = vadd.f32 %v311_v21, %v268_v40 }
  0xcc   :  { %v213_v29 = vpop.f32.mrf.mxu1 }
  0xcd   :  { %v272_v33 = vpop.f32.mrf.mxu2  ;;  %v214_v35 = vadd.f32 %v213_v29, %v108_v24 }
  0xcf   :  { %v273_v46 = vadd.f32 %v272_v33, %v214_v35  ;;  %v386_v47 = vpop.f32.mrf.mxu0 }
  0xd0   :  { %v317_v41 = vpop.f32.mrf.mxu3  ;;  %v387_v57 = vadd.f32 %v386_v47, %v312_v52 }
  0xd1   :  { %v318_v58 = vadd.f32 %v317_v41, %v273_v46 }
  0xd7   :  { %v390_v60 = vpop.f32.mrf.mxu2  ;;  %v427_v61 = vpop.f32.mrf.mxu1 }
  0xd8   :  { %v391_v62 = vadd.f32 %v390_v60, %v318_v58  ;;  %v428_v63 = vadd.f32 %v427_v61, %v387_v57 }
  0xd9   :  { %v431_v0 = vpop.f32.mrf.mxu3 }
  0xda   :  { %v434_v1 = vsub.f32 %v721_v38, %v428_v63  ;;  %v432_v2 = vadd.f32 %v431_v0, %v391_v62 }
  0xdc   :  { %436 = vst [vmem:[#allocation7] sm:$0xff] %v434_v1  ;;  %v435_v6 = vsub.f32 %v743_v55, %v432_v2 }
  0xde   :  { %437 = vst [vmem:[#allocation7 + $0x8] sm:$0xff] %v435_v6 }
  0xdf   :  { %450 = dma.vmem_to_hbm [thread:$0]  %s443_s1, 256, %s445_s23, [#allocation4], %s574_s17, %s574_s17, %s575_s18  }
  0xe0   :  { %571 = dma.done.wait [#allocation4], 256  }
  0xe1   :  { %572 = vsyncadd [#allocation4], 4294967040 }
  0xe2   :  { %455 = vsyncpa [#allocation3], 1 }
  0xe3   :  { %456 = vsyncpa [#allocation6], 1 }
  0xe4   :  { %457 = vsyncpa [#allocation4], 1 }

</bundles_post_ra>
